<compile_context>
chip_gen: v5e
topology: v5e:2x2
jax: 0.10.0
libtpu: 0.0.40
codegen_flags: <defaults>
</compile_context>

<pallas_src>
import functools

import jax
import jax.numpy as jnp
from jax import lax
from jax.experimental import pallas as pl
from jax.experimental.pallas import tpu as pltpu


def _streaming_logits_kernel(x_ref, w_ref, b_ref, logits_ref, lse_ref, m_sc, l_sc):
    """Grid = (row tiles, vocab tiles); vocab axis is the inner 'arbitrary' axis.

      x_ref      : VMEM [tm, H]  bf16  activation row tile (resident across vocab tiles)
      w_ref      : VMEM [tv, H]  bf16  vocab tile of the nn.Linear weight ([V, H] layout)
      b_ref      : VMEM [1, tv]  f32   bias tile
      logits_ref : VMEM [tm, tv] f32   raw logits for this (row, vocab) tile
      lse_ref    : VMEM [tm, 1]  f32   per-row logsumexp (written on the last vocab tile)
      m_sc, l_sc : VMEM [tm, 1]  f32   running max / running sum-exp
    """
    j = pl.program_id(1)

    @pl.when(j == 0)
    def _():
        m_sc[...] = jnp.full_like(m_sc, -jnp.inf)
        l_sc[...] = jnp.zeros_like(l_sc)

    # Linear for this vocab tile: bf16 MXU matmul with f32 accumulation,
    # contracting H of both operands (== x @ W_tile.T, no transposed weight copy).
    logits = lax.dot_general(
        x_ref[...], w_ref[...],
        dimension_numbers=(((1,), (1,)), ((), ())),
        preferred_element_type=jnp.float32,
    ) + b_ref[...]                                    # (tm, tv) f32
    logits_ref[...] = logits                          # straight to the output tile

    # Online (streaming) softmax statistics: lane reduction on the XLU,
    # exp on the EUP -> overlaps the next tile's weight DMA / MXU work.
    m_prev = m_sc[...]
    m_new = jnp.maximum(m_prev, jnp.max(logits, axis=-1, keepdims=True))
    l_sc[...] = l_sc[...] * jnp.exp(m_prev - m_new) + jnp.sum(
        jnp.exp(logits - m_new), axis=-1, keepdims=True)
    m_sc[...] = m_new

    @pl.when(j == pl.num_programs(1) - 1)
    def _():
        lse_ref[...] = m_sc[...] + jnp.log(l_sc[...])


def _finalize_kernel(logits_ref, lse_ref, out_ref):
    """out = logits - logsumexp  (single dense, lane-aligned pass)."""
    out_ref[...] = logits_ref[...] - lse_ref[...]


def prepare_generator_params(weight, bias):
    """One-time parameter prep (hoist out of the decode loop).

    weight: f32 [V, H] in PyTorch nn.Linear layout, bias: f32 [V].
    Returns (w_bf16 [V_pad, H], bias_f32 [1, V_pad], V) with V_pad a multiple
    of 128; padded vocab rows get zero weights and -1e30 bias (~ -inf logits)
    so the log-softmax over the real vocab is unchanged.
    """
    V, H = weight.shape
    V_pad = ((V + 127) // 128) * 128
    if V_pad != V:
        weight = jnp.pad(weight, ((0, V_pad - V), (0, 0)))
        bias = jnp.pad(bias, (0, V_pad - V), constant_values=-1e30)
    return weight.astype(jnp.bfloat16), bias.astype(jnp.float32).reshape(1, V_pad), V


def _vmem_limit_bytes():
    """Generation-aware scoped-VMEM limit: leave headroom for compiler scratch
    and pipeline buffers instead of claiming all physical VMEM (v7x: 64 MiB)."""
    try:
        cap = pltpu.get_tpu_info().vmem_capacity_bytes
    except Exception:
        cap = 64 << 20                         # conservative (v7x-sized) fallback
    headroom = (16 << 20) if cap >= (96 << 20) else cap // 4
    return int(cap - headroom)                 # ~112 MiB on v5e/v6e, ~48 MiB on v7x


@functools.partial(jax.jit, static_argnames=("vocab_size", "tm", "tv"))
def generator_forward(x, w_bf16, bias2, vocab_size=None, *, tm=None, tv=None):
    """x: f32 [B, S, H]; (w_bf16, bias2) from prepare_generator_params.
    Returns f32 [B, S, vocab_size] log-probabilities (Linear + LogSoftmax(dim=-1))."""
    B, S, H = x.shape
    V_pad, H_w = w_bf16.shape
    assert H == H_w and V_pad % 128 == 0
    M = B * S
    x2 = x.reshape(M, H).astype(jnp.bfloat16)          # bf16 MXU operand

    vmem_limit = _vmem_limit_bytes()

    # ---- tile selection ---------------------------------------------------
    if tv is None:                                       # vocab tile: multiple of 128
        tv = 512 if V_pad % 512 == 0 else (256 if V_pad % 256 == 0 else 128)
    tv = min(tv, V_pad)
    assert V_pad % tv == 0 and (tv % 128 == 0 or tv == V_pad)
    n_vt = V_pad // tv

    if tm is None:                                       # row tile (decode-sized M -> 1 tile)
        tm = min(M, 512 if vmem_limit >= (96 << 20) else 256)
    if tm < M:
        tm = max(8, (tm // 8) * 8)                       # sublane-aligned row tiles
    n_rt = pl.cdiv(M, tm)
    # TODO(synk): for very large M the weight is re-streamed once per row tile;
    # swap to a weight-resident path when the bf16 [V, H] weight fits VMEM.

    compiler_params = pltpu.CompilerParams(
        dimension_semantics=("parallel", "arbitrary"),
        vmem_limit_bytes=vmem_limit,
    )

    # Grid-invariant weight/bias (single vocab tile): single-buffer them --
    # double-buffering a block whose index never changes only wastes VMEM.
    if n_vt == 1:
        w_spec = pl.BlockSpec((tv, H), lambda i, j: (j, 0), pipeline_mode=pl.Buffered(1))
        b_spec = pl.BlockSpec((1, tv), lambda i, j: (0, j), pipeline_mode=pl.Buffered(1))
    else:
        w_spec = pl.BlockSpec((tv, H), lambda i, j: (j, 0))
        b_spec = pl.BlockSpec((1, tv), lambda i, j: (0, j))

    logits, lse = pl.pallas_call(
        _streaming_logits_kernel,
        out_shape=(jax.ShapeDtypeStruct((M, V_pad), jnp.float32),
                   jax.ShapeDtypeStruct((M, 1), jnp.float32)),
        grid_spec=pltpu.PrefetchScalarGridSpec(
            num_scalar_prefetch=0,
            grid=(n_rt, n_vt),
            in_specs=[
                pl.BlockSpec((tm, H), lambda i, j: (i, 0)),    # activation row tile
                w_spec,                                        # streamed weight tile
                b_spec,                                        # bias tile
            ],
            out_specs=[
                pl.BlockSpec((tm, tv), lambda i, j: (i, j)),   # raw logits tile
                pl.BlockSpec((tm, 1), lambda i, j: (i, 0)),    # per-row logsumexp
            ],
            scratch_shapes=[pltpu.VMEM((tm, 1), jnp.float32),  # running max
                            pltpu.VMEM((tm, 1), jnp.float32)], # running sum-exp
        ),
        compiler_params=compiler_params,
        cost_estimate=pl.CostEstimate(
            flops=2 * M * H * V_pad,
            transcendentals=M * V_pad,
            bytes_accessed=(M * H * 2 + n_rt * V_pad * H * 2 + V_pad * 4
                            + M * V_pad * 4 + M * 4),
        ),
    )(x2, w_bf16, bias2)

    # Finalize: out = logits - lse (lane-dense elementwise pass; see TODO above).
    out = pl.pallas_call(
        _finalize_kernel,
        out_shape=jax.ShapeDtypeStruct((M, V_pad), jnp.float32),
        grid_spec=pltpu.PrefetchScalarGridSpec(
            num_scalar_prefetch=0,
            grid=(n_rt, n_vt),
            in_specs=[pl.BlockSpec((tm, tv), lambda i, j: (i, j)),
                      pl.BlockSpec((tm, 1), lambda i, j: (i, 0))],
            out_specs=pl.BlockSpec((tm, tv), lambda i, j: (i, j)),
        ),
        compiler_params=pltpu.CompilerParams(
            dimension_semantics=("parallel", "parallel"),
            vmem_limit_bytes=vmem_limit,
        ),
        cost_estimate=pl.CostEstimate(
            flops=M * V_pad, transcendentals=0,
            bytes_accessed=2 * M * V_pad * 4 + M * 4),
    )(logits, lse)

    out = out.reshape(B, S, V_pad)
    if vocab_size is not None and vocab_size != V_pad:
        out = out[..., :vocab_size]
    return out


if __name__ == "__main__":
    # Small shapes consistent with the module: hidden_size=128, tgt_vocab_size=250
    # (deliberately NOT a multiple of 128 to exercise lane padding), batch=2, seq=8.
    B, S, H, V = 2, 8, 128, 250

    key = jax.random.PRNGKey(0)
    k_x, k_w, k_b = jax.random.split(key, 3)

    bound = 1.0 / (H ** 0.5)                  # nn.Linear default U(-1/sqrt(H), 1/sqrt(H))
    weight = jax.random.uniform(k_w, (V, H), jnp.float32, -bound, bound)
    bias = jax.random.uniform(k_b, (V,), jnp.float32, -bound, bound)
    x = jax.random.normal(k_x, (B, S, H), dtype=jnp.float32)

    # One-time parameter prep (bf16 cast + vocab padding), hoisted out of the
    # per-step forward as the perf review requires.
    w_bf16, b2, vocab = prepare_generator_params(weight, bias)

    # tm=8, tv=128 -> 2x2 grid: exercises both the parallel row axis and the
    # streaming (online log-softmax) vocab axis.
    out = generator_forward(x, w_bf16, b2, vocab_size=vocab, tm=8, tv=128)
    out = jax.block_until_ready(out)

    # Reference (plain JAX, f32); tolerance accounts for bf16 MXU operands.
    ref = jax.nn.log_softmax(x @ weight.T + bias[None, None, :], axis=-1)
    assert out.shape == (B, S, V)
    err = float(jnp.max(jnp.abs(out - ref)))
    assert jnp.allclose(out, ref, atol=3e-2, rtol=3e-2), (
        f"mismatch vs reference (max abs err {err})")

    print("KERNEL_OK")
</pallas_src>

<mosaic_0001>
module attributes {stable_mosaic.version = 11 : i64} {
  func.func @_streaming_logits_kernel(%arg0: i32, %arg1: i32, %arg2: memref<8x128xbf16, #tpu.memory_space<vmem>>, %arg3: memref<128x128xbf16, #tpu.memory_space<vmem>>, %arg4: memref<1x128xf32, #tpu.memory_space<vmem>>, %arg5: memref<8x128xf32, #tpu.memory_space<vmem>>, %arg6: memref<8x1xf32, #tpu.memory_space<vmem>>, %arg7: memref<8x1xf32, #tpu.memory_space<vmem>>, %arg8: memref<8x1xf32, #tpu.memory_space<vmem>>) attributes {dimension_semantics = [#tpu.dimension_semantics<parallel>, #tpu.dimension_semantics<arbitrary>], iteration_bounds = array<i64: 2, 2>, scalar_prefetch = 0 : i64, scratch_operands = 2 : i64, tpu.core_type = #tpu.core_type<tc>, window_params = [{transform_indices = @transform_0, window_bounds = array<i64: 8, 128>}, {transform_indices = @transform_1, window_bounds = array<i64: 128, 128>}, {transform_indices = @transform_2, window_bounds = array<i64: 1, 128>}, {transform_indices = @transform_3, window_bounds = array<i64: 8, 128>}, {transform_indices = @transform_4, window_bounds = array<i64: 8, 1>}]} {
    %c0_i32 = arith.constant 0 : i32
    %0 = arith.cmpi eq, %arg1, %c0_i32 : i32
    %1 = arith.extui %0 : i1 to i32
    %c0_i32_0 = arith.constant 0 : i32
    %2 = arith.cmpi ne, %1, %c0_i32_0 : i32
    scf.if %2 {
      %cst_19 = arith.constant 0xFF800000 : f32
      %29 = vector.broadcast %cst_19 : f32 to vector<8x1xf32>
      %c0_20 = arith.constant 0 : index
      %c0_21 = arith.constant 0 : index
      %30 = vector.load %arg7[%c0_20, %c0_21] : memref<8x1xf32, #tpu.memory_space<vmem>>, vector<8x1xf32>
      tpu.vector_store %arg7[%c0_20, %c0_21], %29 {strides = array<i32>} : memref<8x1xf32, #tpu.memory_space<vmem>>, vector<8x1xf32>,
      %cst_22 = arith.constant 0.000000e+00 : f32
      %31 = vector.broadcast %cst_22 : f32 to vector<8x1xf32>
      %c0_23 = arith.constant 0 : index
      %c0_24 = arith.constant 0 : index
      %32 = vector.load %arg8[%c0_23, %c0_24] : memref<8x1xf32, #tpu.memory_space<vmem>>, vector<8x1xf32>
      tpu.vector_store %arg8[%c0_23, %c0_24], %31 {strides = array<i32>} : memref<8x1xf32, #tpu.memory_space<vmem>>, vector<8x1xf32>,
    } else {
    }
    %c0 = arith.constant 0 : index
    %c0_1 = arith.constant 0 : index
    %3 = vector.load %arg2[%c0, %c0_1] : memref<8x128xbf16, #tpu.memory_space<vmem>>, vector<8x128xbf16>
    %c0_2 = arith.constant 0 : index
    %c0_3 = arith.constant 0 : index
    %4 = vector.load %arg3[%c0_2, %c0_3] : memref<128x128xbf16, #tpu.memory_space<vmem>>, vector<128x128xbf16>
    %cst = arith.constant dense<0.000000e+00> : vector<8x128xf32>
    %5 = tpu.matmul %3, %4, %cst {dimension_numbers = #tpu.dot_dimension_numbers<[1], [1], [0], [0], [0, 0, 1, 0], [], []>} : vector<8x128xbf16>, vector<128x128xbf16>, vector<8x128xf32> -> vector<8x128xf32>
    %c0_4 = arith.constant 0 : index
    %c0_5 = arith.constant 0 : index
    %6 = vector.load %arg4[%c0_4, %c0_5] : memref<1x128xf32, #tpu.memory_space<vmem>>, vector<1x128xf32>
    %7 = vector.broadcast %6 : vector<1x128xf32> to vector<8x128xf32>
    %8 = arith.addf %5, %7 : vector<8x128xf32>
    %c0_6 = arith.constant 0 : index
    %c0_7 = arith.constant 0 : index
    %9 = vector.load %arg5[%c0_6, %c0_7] : memref<8x128xf32, #tpu.memory_space<vmem>>, vector<8x128xf32>
    tpu.vector_store %arg5[%c0_6, %c0_7], %8 {strides = array<i32>} : memref<8x128xf32, #tpu.memory_space<vmem>>, vector<8x128xf32>,
    %c0_8 = arith.constant 0 : index
    %c0_9 = arith.constant 0 : index
    %10 = vector.load %arg7[%c0_8, %c0_9] : memref<8x1xf32, #tpu.memory_space<vmem>>, vector<8x1xf32>
    %cst_10 = arith.constant dense<0xFF800000> : vector<8xf32>
    %11 = vector.multi_reduction <maximumf>, %8, %cst_10 [1] : vector<8x128xf32> to vector<8xf32>
    %12 = vector.shape_cast %11 : vector<8xf32> to vector<8x1xf32>
    %13 = arith.maximumf %10, %12 : vector<8x1xf32>
    %c0_11 = arith.constant 0 : index
    %c0_12 = arith.constant 0 : index
    %14 = vector.load %arg8[%c0_11, %c0_12] : memref<8x1xf32, #tpu.memory_space<vmem>>, vector<8x1xf32>
    %15 = arith.subf %10, %13 : vector<8x1xf32>
    %16 = math.exp %15 : vector<8x1xf32>
    %17 = arith.mulf %14, %16 : vector<8x1xf32>
    %18 = vector.broadcast %13 : vector<8x1xf32> to vector<8x128xf32>
    %19 = arith.subf %8, %18 : vector<8x128xf32>
    %20 = math.exp %19 : vector<8x128xf32>
    %cst_13 = arith.constant dense<0.000000e+00> : vector<8xf32>
    %21 = vector.multi_reduction <add>, %20, %cst_13 [1] : vector<8x128xf32> to vector<8xf32>
    %22 = vector.shape_cast %21 : vector<8xf32> to vector<8x1xf32>
    %23 = arith.addf %17, %22 : vector<8x1xf32>
    %c0_14 = arith.constant 0 : index
    %c0_15 = arith.constant 0 : index
    %24 = vector.load %arg8[%c0_14, %c0_15] : memref<8x1xf32, #tpu.memory_space<vmem>>, vector<8x1xf32>
    tpu.vector_store %arg8[%c0_14, %c0_15], %23 {strides = array<i32>} : memref<8x1xf32, #tpu.memory_space<vmem>>, vector<8x1xf32>,
    %c0_16 = arith.constant 0 : index
    %c0_17 = arith.constant 0 : index
    %25 = vector.load %arg7[%c0_16, %c0_17] : memref<8x1xf32, #tpu.memory_space<vmem>>, vector<8x1xf32>
    tpu.vector_store %arg7[%c0_16, %c0_17], %13 {strides = array<i32>} : memref<8x1xf32, #tpu.memory_space<vmem>>, vector<8x1xf32>,
    %c1_i32 = arith.constant 1 : i32
    %26 = arith.cmpi eq, %arg1, %c1_i32 : i32
    %27 = arith.extui %26 : i1 to i32
    %c0_i32_18 = arith.constant 0 : i32
    %28 = arith.cmpi ne, %27, %c0_i32_18 : i32
    scf.if %28 {
      %c0_19 = arith.constant 0 : index
      %c0_20 = arith.constant 0 : index
      %29 = vector.load %arg7[%c0_19, %c0_20] : memref<8x1xf32, #tpu.memory_space<vmem>>, vector<8x1xf32>
      %c0_21 = arith.constant 0 : index
      %c0_22 = arith.constant 0 : index
      %30 = vector.load %arg8[%c0_21, %c0_22] : memref<8x1xf32, #tpu.memory_space<vmem>>, vector<8x1xf32>
      %31 = math.log %30 : vector<8x1xf32>
      %32 = arith.addf %29, %31 : vector<8x1xf32>
      %c0_23 = arith.constant 0 : index
      %c0_24 = arith.constant 0 : index
      %33 = vector.load %arg6[%c0_23, %c0_24] : memref<8x1xf32, #tpu.memory_space<vmem>>, vector<8x1xf32>
      tpu.vector_store %arg6[%c0_23, %c0_24], %32 {strides = array<i32>} : memref<8x1xf32, #tpu.memory_space<vmem>>, vector<8x1xf32>,
    } else {
    }
    return
  }
  func.func @transform_0(%arg0: i32, %arg1: i32) -> (i32, i32) {
    %c0_i32 = arith.constant 0 : i32
    %c0_i32_0 = arith.constant 0 : i32
    return %arg0, %c0_i32 : i32, i32
  }
  func.func @transform_1(%arg0: i32, %arg1: i32) -> (i32, i32) {
    %c0_i32 = arith.constant 0 : i32
    %c0_i32_0 = arith.constant 0 : i32
    return %arg1, %c0_i32 : i32, i32
  }
  func.func @transform_2(%arg0: i32, %arg1: i32) -> (i32, i32) {
    %c0_i32 = arith.constant 0 : i32
    %c0_i32_0 = arith.constant 0 : i32
    return %c0_i32, %arg1 : i32, i32
  }
  func.func @transform_3(%arg0: i32, %arg1: i32) -> (i32, i32) {
    %c0_i32 = arith.constant 0 : i32
    return %arg0, %arg1 : i32, i32
  }
  func.func @transform_4(%arg0: i32, %arg1: i32) -> (i32, i32) {
    %c0_i32 = arith.constant 0 : i32
    %c0_i32_0 = arith.constant 0 : i32
    return %arg0, %c0_i32 : i32, i32
  }
}

module attributes {stable_mosaic.version = 11 : i64} {
  func.func @_finalize_kernel(%arg0: i32, %arg1: i32, %arg2: memref<8x128xf32, #tpu.memory_space<vmem>>, %arg3: memref<8x1xf32, #tpu.memory_space<vmem>>, %arg4: memref<8x128xf32, #tpu.memory_space<vmem>>) attributes {dimension_semantics = [#tpu.dimension_semantics<parallel>, #tpu.dimension_semantics<parallel>], iteration_bounds = array<i64: 2, 2>, scalar_prefetch = 0 : i64, scratch_operands = 0 : i64, tpu.core_type = #tpu.core_type<tc>, window_params = [{transform_indices = @transform_0, window_bounds = array<i64: 8, 128>}, {transform_indices = @transform_1, window_bounds = array<i64: 8, 1>}, {transform_indices = @transform_2, window_bounds = array<i64: 8, 128>}]} {
    %c0 = arith.constant 0 : index
    %c0_0 = arith.constant 0 : index
    %0 = vector.load %arg2[%c0, %c0_0] : memref<8x128xf32, #tpu.memory_space<vmem>>, vector<8x128xf32>
    %c0_1 = arith.constant 0 : index
    %c0_2 = arith.constant 0 : index
    %1 = vector.load %arg3[%c0_1, %c0_2] : memref<8x1xf32, #tpu.memory_space<vmem>>, vector<8x1xf32>
    %2 = vector.broadcast %1 : vector<8x1xf32> to vector<8x128xf32>
    %3 = arith.subf %0, %2 : vector<8x128xf32>
    %c0_3 = arith.constant 0 : index
    %c0_4 = arith.constant 0 : index
    %4 = vector.load %arg4[%c0_3, %c0_4] : memref<8x128xf32, #tpu.memory_space<vmem>>, vector<8x128xf32>
    tpu.vector_store %arg4[%c0_3, %c0_4], %3 {strides = array<i32>} : memref<8x128xf32, #tpu.memory_space<vmem>>, vector<8x128xf32>,
    return
  }
  func.func @transform_0(%arg0: i32, %arg1: i32) -> (i32, i32) {
    %c0_i32 = arith.constant 0 : i32
    return %arg0, %arg1 : i32, i32
  }
  func.func @transform_1(%arg0: i32, %arg1: i32) -> (i32, i32) {
    %c0_i32 = arith.constant 0 : i32
    %c0_i32_0 = arith.constant 0 : i32
    return %arg0, %c0_i32 : i32, i32
  }
  func.func @transform_2(%arg0: i32, %arg1: i32) -> (i32, i32) {
    %c0_i32 = arith.constant 0 : i32
    return %arg0, %arg1 : i32, i32
  }
}

</mosaic_0001>

<bundles_post_ra>
// kernel: generator_forward.3
= control target key start
LH: loop header
LB: loop body
LE: loop exit
PB: predicated region body
PF: predicated region fallthrough
CT: control target
= control target key end

     0   :  { %7 = vsyncpa [#allocation3], 0  ;;  %s625_s0 = inlined_call_operand.vmem [shape: f32[16,256], index: 0, kind: input, shape index: {}]   ;;  %s626_s1 = inlined_call_operand.vmem [shape: f32[16,1], index: 1, kind: input, shape index: {}]   ;;  %s627_s2 = inlined_call_operand.hbm [shape: f32[16,256], index: 2, kind: output, shape index: {}]  }
   0x1   :  { %9 = vsyncpa [#allocation3 + $0x1], 0  ;;  %s500_s9 = smov 0   ;;  %s502_s10 = smov 0  }
   0x2   :  { %s504_s11 = smov 0   ;;  %s506_s12 = smov 0  }
   0x3   :  { %s508_s13 = smov 0   ;;  %s510_s14 = smov 0  }
   0x4   :  { %s512_s15 = smov 0   ;;  %s514_s16 = smov 0  }
   0x5 LB: > { %632 = sst [smem:[#allocation5_spill]] %s474_s14  ;;  %s301_s17 = sadd.s32 4294967295, %s482_s16   ;;  %s482_s16 = sphi %s514_s16, %s15_s16   ;;  %s478_s15 = sphi %s512_s15, %s641_s15   ;;  %s474_s14 = sphi %s510_s14, %s640_s14   ;;  %s470_s13 = sphi %s508_s13, %s639_s13   ;;  %s466_s12 = sphi %s506_s12, %s638_s12   ;;  %s462_s11 = sphi %s504_s11, %s644_s11   ;;  %s458_s10 = sphi %s502_s10, %s643_s10   ;;  %s454_s9 = sphi %s500_s9, %s642_s9  }
   0x6   : > { %633 = sst [smem:[#allocation6_spill]] %s478_s15  ;;  %s302_s18 = sadd.s32 4294967294, %s482_s16  }
   0x7   : > { %s24_s19 = sadd.s32 1, %s474_s14  ;;  %s27_s20 = sadd.s32 1, %s478_s15 }
   0x8   : > { %p25_p0 = scmp.ge.s32.totalorder %s24_s19, 2  ;;  %p100_p1 = scmp.ne.s32.totalorder %s462_s11, %s458_s10 }
   0x9   : > { %p101_p2 = scmp.eq.s32.totalorder %s301_s17, 3  ;;  %p106_p5 = scmp.ne.s32.totalorder %s458_s10, %s454_s9 }
   0xa   : > { %s646_s19 = smov (%p25_p0, %s24_s19), 0  ;;  %s648_s20 = smov (!%p25_p0, %s27_s20), %s478_s15 }
   0xb   : > { %634 = sst [smem:[#allocation7_spill]] %s646_s19  ;;  %s86_s21 = ssub.s32 %s474_s14, %s646_s19 }
   0xc   : > { %p551_p3 = por %p101_p2, %p100_p1  ;;  %p29_p4 = scmp.ge.s32.totalorder %s648_s20, 2 }
   0xd   : > { %p107_p6 = scmp.eq.s32.totalorder %s302_s18, 3  ;;  %p305_p7 = scmp.ge.s32.totalorder %s482_s16, 1 }
   0xe   : > { %s650_s20 = smov (%p29_p4, %s648_s20), 0  ;;  %p143_p9 = scmp.lt.s32.totalorder %s482_s16, 5 }
   0xf   : > { %636 = sst [smem:[#allocation8_spill]] %s650_s20  ;;  %p560_p8 = por %p107_p6, %p106_p5 }
  0x10   : > { %s85_s24 = ssub.s32 %s478_s15, %s650_s20  ;;  %s90_s25 = sadd.s32 1, %s462_s11 }
  0x11   : > { %s87_s26 = sor.u32 %s86_s21, %s85_s24  ;;  %p144_p10 = pnand %p305_p7, %p143_p9 }
  0x12   : > { %p88_p11 = scmp.eq.s32.totalorder %s87_s26, 0  ;;  %p172_p12 = scmp.lt.s32.totalorder (!%p144_p10), %s470_s13, 1 }
  0x13   : > { %147 = sbr.rel (%p144_p10) target bundleno = 149 (0x95), region = 28  ;;  %p174_p13 = scmp.lt.s32.totalorder (!%p144_p10), %s466_s12, 1 }
  0x14   : > { %s569_s27 = scalar_select %p88_p11, %s462_s11, %s90_s25  }
  0x15   : > { %s311_s7 = sshll.u32 (!%p144_p10), %s470_s13, 1  ;;  %s169_s8 = sand.u32 (!%p144_p10), 1, %s458_s10  }
  0x16   : > { %s204_s18 = sadd.s32 (!%p144_p10), %s466_s12, %s311_s7  ;;  %s306_s21 = sshll.u32 (!%p144_p10), %s169_s8, 3 }
  0x17   : > { %s312_s25 = sshll.u32 (!%p144_p10), %s204_s18, 3  ;;  %s171_s30 = scalar_lea.vmem (!%p144_p10), [#allocation2], %s306_s21 }
  0x18   : > { %v484_v0 = vmov 0   ;;  %s173_s28 = scalar_select %p172_p12, %s470_s13, 1 }
  0x19   : > { %387 = vset.pattern.permute.xlu0 %v484_v0  ;;  %s175_s5 = scalar_select %p174_p13, %s466_s12, 1 }
  0x1a   : > { %s309_s29 = sshll.u32 %s173_s28, 3  ;;  %s307_s6 = sshll.u32 %s173_s28, 1 }
  0x1b   : > { %s183_s4 = scalar_lea.vmem %s626_s1, %s309_s29  ;;  %s177_s17 = sadd.s32 %s307_s6, %s175_s5 }
  0x1c   : > { %v185_v1 = vld [vmem:[%s183_s4] sm:$0xff]  ;;  %s308_s24 = sshll.u32 %s177_s17, 3  ;;  %s206_s29 = scalar_lea.hbm %s627_s2, %s312_s25 }
  0x1d   : > { %188 = vperm.xlu0 %387, %v185_v1   ;;  %s179_s19 = scalar_lea.vmem %s625_s0, %s308_s24  ;;  %s208_s3 = sshll.u32 %s171_s30, 4  ;;  %s209_s3 = int_to_ptr.vmem [resolvable:$true] %s208_s3 }
  0x1e   : > { %v184_v2 = vld [vmem:[%s179_s19] sm:$0xff]  ;;  %s210_s28 = sshll.u32 %s206_s29, 4  ;;  %s194_s12 = scalar_lea.sflag [#allocation3], %s169_s8  ;;  %s211_s28 = int_to_ptr.hbm [resolvable:$true] %s210_s28 }
  0x1f   : > { %s402_s13 = sshra.s32 %s211_s28, 4  ;;  %s408_s19 = scalar_lea.hbm %s627_s2, 32  ;;  %s403_s13 = int_to_ptr.hbm [resolvable:$true] %s402_s13 }
  0x20   : > { %s404_s4 = scalar_lea.hbm %s403_s13, 8  ;;  %p409_p4 = scmp.lt.s32.totalorder %s403_s13, %s627_s2 }
  0x21   : > { %p405_p0 = scmp.ne.s32.totalorder %s403_s13, %s404_s4  ;;  %p410_p5 = scmp.lt.s32.totalorder %s408_s19, %s404_s4 }
  0x23   : > { %p406_p1 = pnand %p405_p0, %p551_p3  ;;  %p411_p6 = por %p410_p5, %p409_p4 }
  0x25   : > { %p407_p2 = pneg %p406_p1 }
  0x27   : > { %p412_p7 = pnand %p411_p6, %p407_p2 }
  0x8f   : > { %v189_v3 = vpop.permute.xlu0 %188 }
  0x90   : > { %v191_v4 = vsub.f32 %v184_v2, %v189_v3 }
  0x92   : > { %192 = vst [vmem:[%s171_s30] sm:$0xff] %v191_v4 }
  0x93   : > { %415 = shalt.err (!%p412_p7)
}
  0x94   : > { %315 = dma.vmem_to_hbm [thread:$0]  (%p551_p3), %s209_s3, 128, %s211_s28, %s194_s12  }
  0x95 PF: > { %p321_p9 = scmp.ge.s32.totalorder %s482_s16, 2  ;;  %s222_s6 = sand.u32 1, %s454_s9  }
  0x96   : > { %s223_s7 = scalar_lea.sflag [#allocation3], %s222_s6 }
  0x97   : > { %p318_p10 = pnand %p321_p9, %p560_p8 }
  0x99   : > { %p319_p11 = pneg %p318_p10 }
  0x9b   : > { %449 = dma.done.wait (%p319_p11), %s223_s7, 128  }
  0x9c   : > { %451 = vsyncadd (%p319_p11), %s223_s7, 4294967168  ;;  %s15_s16 = sadd.s32 1, %s482_s16   ;;  %s638_s12 = sld [smem:[#allocation5_spill]] }
  0x9d   : > { %p12_p12 = scmp.ge.s32.totalorder %s15_s16, 6   ;;  %s639_s13 = sld [smem:[#allocation6_spill]] }
  0x9e   : > { %s640_s14 = sld [smem:[#allocation7_spill]]  ;;  %s642_s9 = smov %s458_s10 }
  0x9f   : > { %s641_s15 = sld [smem:[#allocation8_spill]]  ;;  %s643_s10 = smov %s462_s11 }
  0xa0   : > { %s644_s11 = smov %s569_s27  ;;  %14 = sbr.rel (!%p12_p12) target bundleno = 5 (0x5), region = 66 }
  0xa5   :  { %229 = vsyncpa [#allocation3], 1 }
  0xa6   :  { %231 = vsyncpa [#allocation3 + $0x1], 1 }

// kernel: generator_forward.2
= control target key start
LH: loop header
LB: loop body
LE: loop exit
PB: predicated region body
PF: predicated region fallthrough
CT: control target
= control target key end

     0   :  { %s969_s0 = inlined_call_operand.vmem [shape: bf16[16,128], index: 0, kind: input, shape index: {}]   ;;  %s970_s1 = inlined_call_operand.hbm [shape: bf16[256,128], index: 1, kind: input, shape index: {}]   ;;  %s971_s2 = inlined_call_operand.vmem [shape: f32[1,256], index: 2, kind: input, shape index: {}]   ;;  %s972_s3 = inlined_call_operand.vmem [shape: f32[16,256], index: 3, kind: output, shape index: {0}]   ;;  %s973_s4 = inlined_call_operand.vmem [shape: f32[16,1], index: 4, kind: output, shape index: {1}]  }
   0x1   :  { %975 = sst [smem:[#allocation9_spill]] %s970_s1 }
   0x2   :  { %10 = vsyncpa [#allocation5], 0 }
   0x3   :  { %12 = vsyncpa [#allocation5 + $0x1], 0  ;;  %s820_s15 = smov 0   ;;  %s822_s16 = smov 0  }
   0x4   :  { %s824_s17 = smov 0   ;;  %s826_s18 = smov 0  }
   0x5   :  { %s828_s19 = smov 0   ;;  %s830_s20 = smov 0  }
   0x6   :  { %s832_s21 = smov 0   ;;  %s834_s22 = smov 0  }
   0x7 LB: > { %s550_s23 = sadd.s32 4294967295, %s788_s22   ;;  %s27_s24 = sadd.s32 1, %s780_s20  ;;  %s788_s22 = sphi %s834_s22, %s18_s22   ;;  %s784_s21 = sphi %s832_s21, %s989_s21   ;;  %s780_s20 = sphi %s830_s20, %s988_s20   ;;  %s776_s19 = sphi %s828_s19, %s987_s19   ;;  %s772_s18 = sphi %s826_s18, %s986_s18   ;;  %s768_s17 = sphi %s824_s17, %s985_s17   ;;  %s764_s16 = sphi %s822_s16, %s984_s16   ;;  %s760_s15 = sphi %s820_s15, %s983_s15  }
   0x8   : > { %p28_p0 = scmp.ge.s32.totalorder %s27_s24, 2  ;;  %s30_s25 = sadd.s32 1, %s784_s21 }
   0x9   : > { %s63_s26 = sadd.s32 1, %s768_s17  ;;  %p70_p1 = scmp.ne.s32.totalorder %s768_s17, %s764_s16 }
   0xa   : > { %s991_s24 = smov (%p28_p0, %s27_s24), 0  ;;  %s993_s25 = smov (!%p28_p0, %s30_s25), %s784_s21 }
   0xb   : > { %976 = sst [smem:[#allocation7_spill]] %s991_s24  ;;  %s60_s27 = ssub.s32 %s780_s20, %s991_s24 }
   0xc   : > { %p71_p2 = scmp.eq.s32.totalorder %s788_s22, 0  ;;  %p32_p3 = scmp.ge.s32.totalorder %s993_s25, 2 }
   0xd   : > { %p61_p4 = scmp.eq.s32.totalorder %s60_s27, 0  ;;  %p76_p6 = scmp.ne.s32.totalorder %s764_s16, %s760_s15 }
   0xe   : > { %p870_p5 = por %p71_p2, %p70_p1  ;;  %s995_s25 = smov (%p32_p3, %s993_s25), 0 }
   0xf   : > { %978 = sst [smem:[#allocation8_spill]] %s995_s25  ;;  %p77_p7 = scmp.eq.s32.totalorder %s550_s23, 0 }
  0x10   : > { %s878_s29 = scalar_select %p61_p4, %s768_s17, %s63_s26  }
  0x11   : > { %p614_p8 = scmp.lt.s32.totalorder %s788_s22, 4  ;;  %s187_s30 = sand.u32 1, %s768_s17  }
  0x12   : > { %p882_p9 = por %p77_p7, %p76_p6  ;;  %s554_s6 = sshll.u32 %s187_s30, 6 }
  0x13   : > { %s599_s7 = sshll.u32 %s780_s20, 6  ;;  %s980_s1 = sld [smem:[#allocation9_spill]] }
  0x14   : > { %s191_s12 = scalar_lea.vmem [#allocation4], %s554_s6  ;;  %p611_p10 = pnand %p614_p8, %p870_p5 }
  0x15   : > { %s199_s13 = sshll.u32 %s191_s12, 4  ;;  %p557_p11 = scmp.ge.s32.totalorder %s788_s22, 1  ;;  %s200_s13 = int_to_ptr.vmem [resolvable:$true] %s199_s13 }
  0x16   : > { %p213_p12 = scmp.lt.s32.totalorder %s788_s22, 5  ;;  %s188_s14 = scalar_lea.sflag [#allocation5], %s187_s30 }
  0x17   : > { %s790_s15 = smov 64   ;;  %s791_s23 = smov 4  }
  0x18   : > { %p214_p13 = pnand %p557_p11, %p213_p12 }
  0x19   : > { %s196_s10 = scalar_lea.hbm %s980_s1, %s599_s7  ;;  %s219_s26 = sand.u32 (!%p214_p13), 1, %s764_s16  }
  0x1a   : > { %s197_s11 = sshll.u32 %s196_s10, 4  ;;  %217 = sbr.rel (%p214_p13) target bundleno = 622 (0x26e), region = 32  ;;  %s198_s11 = int_to_ptr.hbm [resolvable:$true] %s197_s11 }
  0x1b   : > { %613 = dma.hbm_to_vmem [thread:$0]  (!%p611_p10), %s198_s11, 1024, %s200_s13, %s188_s14, %s790_s15, %s790_s15, %s791_s23  }
  0x1c   : > { %s558_s27 = sshll.u32 (!%p214_p13), %s219_s26, 6  ;;  %s220_s7 = scalar_lea.sflag (!%p214_p13), [#allocation5], %s219_s26 }
  0x1d   : > { %s895_s8 = scalar_lea.vmem (!%p214_p13), [#allocation4], %s558_s27 }
  0x1f   : > { %755 = dma.done.wait (%p882_p9), %s220_s7, 1024  }
  0x20   : > { %757 = vsyncadd (%p882_p9), %s220_s7, 4294966272  ;;  %p263_p0 = scmp.lt.s32.totalorder %s776_s19, 1  ;;  %p268_p1 = scmp.lt.s32.totalorder %s772_s18, 1 }
  0x21   : > { %p563_p2 = scmp.ne.s32.totalorder %s772_s18, 0 }
  0x22   : > { %s997_s19 = smov (!%p263_p0, %s776_s19), 1 }
  0x23   : > { %s905_s28 = scalar_select %p268_p1, %s772_s18, 1 }
  0x24   : > { %s559_s30 = sshll.u32 %s997_s19, 2  ;;  %s560_s6 = sshll.u32 %s997_s19, 1 }
  0x25   : > { %s910_s11 = scalar_lea.vmem %s969_s0, %s559_s30  ;;  %s270_s13 = scalar_lea.vmem %s971_s2, %s905_s28 }
  0x26   : > { %s276_s14 = sadd.s32 %s560_s6, %s905_s28  ;;  %s562_s15 = sshll.u32 %s997_s19, 3 }
  0x27   : > { %s561_s23 = sshll.u32 %s276_s14, 3  ;;  %s920_s7 = scalar_lea.vmem %s973_s4, %s562_s15 }
  0x28   : > { %s278_s24 = scalar_lea.vmem %s972_s3, %s561_s23  ;;  %286 = sbr.rel (%p563_p2) target bundleno = 48 (0x30), region = 40 }
  0x2d   : > { %vm287_vm0 = vcmask 7168   ;;  %v792_v0 = vmov -inf   ;;  %v793_v1 = vmov 0.0  }
  0x2e   : > { %288 = vst.msk [vmem:[#allocation2] sm:$0xff] %vm287_vm0, %v792_v0 }
  0x2f   : > { %289 = vst.msk [vmem:[#allocation3] sm:$0xff] %vm287_vm0, %v793_v1 }
  0x30 PF: > { %v607_v2 = vld [vmem:[%s895_s8 + $0x38] sm:$0xff]  ;;  %v606_v3 = vld [vmem:[%s895_s8 + $0x30] sm:$0xff]  ;;  %v605_v4 = vld [vmem:[%s895_s8 + $0x28] sm:$0xff]  ;;  %v794_v15 = vmov 0   ;;  %vm393_vm1 = vcmask 7168   ;;  %p596_p3 = scmp.ne.s32.totalorder %s772_s18, 1 }
  0x31   : > { %359 = vmatpush.bf16.xpose.msra.mxu0 %v607_v2  ;;  %v604_v5 = vld [vmem:[%s895_s8 + $0x20] sm:$0xff]  ;;  %v603_v6 = vld [vmem:[%s895_s8 + $0x18] sm:$0xff]  ;;  %v602_v7 = vld [vmem:[%s895_s8 + $0x10] sm:$0xff]  ;;  %684 = vset.pattern.permute.xlu0 %v794_v15 }
  0x32   : > { %v601_v8 = vld [vmem:[%s895_s8 + $0x8] sm:$0xff]  ;;  %v600_v9 = vld [vmem:[%s895_s8] sm:$0xff]  ;;  %v290_v10 = vld [vmem:[%s910_s11] sm:$0xf] }
  0x33   : > { %v685_v11 = vld [vmem:[%s270_s13] ss:$0 sm:$0xff] }
  0x35   : > { %v373_v16 = vld [vmem:[#allocation2] sm:$0xff] }
  0x36   : > { %v377_v26 = vld [vmem:[#allocation3] sm:$0xff] }
  0x39   : > { %360 = vmatpush.bf16.xpose.msra.mxu0 %v606_v3 }
  0x41   : > { %361 = vmatpush.bf16.xpose.msra.mxu0 %v605_v4 }
  0x49   : > { %362 = vmatpush.bf16.xpose.msra.mxu0 %v604_v5 }
  0x51   : > { %363 = vmatpush.bf16.xpose.msra.mxu0 %v603_v6 }
  0x59   : > { %364 = vmatpush.bf16.xpose.msra.mxu0 %v602_v7 }
  0x61   : > { %365 = vmatpush.bf16.xpose.msra.mxu0 %v601_v8 }
  0x69   : > { %366 = vmatpush.bf16.xpose.msra.mxu0 %v600_v9 }
  0x70   : > { %367 = vmatmul.bf16.vlgmr.msra.gmra.mxu0 %v290_v10 }
  0xed   : > { %v368_v12 = vpop.f32.mrf.mxu0 }
  0xee   : > { %v369_v13 = vadd.f32 %v685_v11, %v368_v12 }
  0xf0   : > { %372 = vst [vmem:[%s278_s24] sm:$0xff] %v369_v13  ;;  %374 = vmax.xlane.f32.xlu0 %v369_v13 }
  0xf5   : > { %v370_v14 = vpop.f32.mrf.mxu0 }
 0x163   : > { %v375_v17 = vpop.xlane.xlu0 %374 }
 0x164   : > { %v376_v18 = vmax.f32 %v373_v16, %v375_v17 }
 0x166   : > { %v378_v19 = vsub.f32 %v373_v16, %v376_v18  ;;  %395 = vst.msk [vmem:[#allocation2] sm:$0xff] %vm393_vm1, %v376_v18  ;;  %384 = vperm.xlu0 %684, %v376_v18  }
 0x168   : > { %v379_v24 = vmul.f32 1.442695, %v378_v19 }
 0x1d8   : > { %v385_v20 = vpop.permute.xlu0 %384 }
 0x1d9   : > { %v387_v21 = vsub.f32 %v369_v13, %v385_v20 }
 0x1db   : > { %v388_v22 = vmul.f32 1.442695, %v387_v21 }
 0x1dd   : > { %686 = vpow2.f32 %v388_v22 }
 0x1de   : > { %688 = vpow2.f32 %v379_v24 }
 0x1e3   : > { %v687_v23 = vpop.eup %686 }
 0x1e4   : > { %390 = vadd.xlane.f32.xlu1 %v687_v23  ;;  %v689_v25 = vpop.eup %688 }
 0x1e5   : > { %v381_v27 = vmul.f32 %v689_v25, %v377_v26 }
 0x256   : > { %399 = sbr.rel (%p596_p3) target bundleno = 622 (0x26e), region = 44 }
 0x257   : > { %v391_v28 = vpop.xlane.xlu1 %390 }
 0x258   : > { %v392_v29 = vadd.f32 %v391_v28, %v381_v27 }
 0x25a   : > { %394 = vst.msk [vmem:[#allocation3] sm:$0xff] %vm393_vm1, %v392_v29 }
 0x25b   : > { %v400_v32 = vld [vmem:[#allocation2] sm:$0xff] }
 0x261   : > { %v401_v30 = vld [vmem:[#allocation3] sm:$0xff] }
 0x262   : > { %690 = vlog2.f32 %v401_v30 }
 0x268   : > { %v691_v31 = vpop.eup %690 }
 0x269   : > { %v403_v33 = vmul.f32 0.6931472, %v691_v31 }
 0x26b   : > { %v404_v34 = vadd.f32 %v403_v33, %v400_v32 }
 0x26d   : > { %405 = vst.msk [vmem:[%s920_s7] sm:$0xff] %vm393_vm1, %v404_v34 }
 0x26e PF: > { %s18_s22 = sadd.s32 1, %s788_s22   ;;  %s981_s24 = sld [smem:[#allocation7_spill]] }
 0x26f   : > { %p15_p4 = scmp.ge.s32.totalorder %s18_s22, 6   ;;  %s982_s25 = sld [smem:[#allocation8_spill]] }
 0x270   : > { %s983_s15 = smov %s764_s16  ;;  %s984_s16 = smov %s768_s17 }
 0x271   : > { %s985_s17 = smov %s878_s29  ;;  %s986_s18 = smov %s780_s20 }
 0x272   : > { %s987_s19 = smov %s784_s21  ;;  %17 = sbr.rel (!%p15_p4) target bundleno = 7 (0x7), region = 98 }
 0x274   : > { %s988_s20 = smov %s981_s24 }
 0x275   : > { %s989_s21 = smov %s982_s25 }
 0x277   :  { %447 = vsyncpa [#allocation5], 1 }
 0x278   :  { %449 = vsyncpa [#allocation5 + $0x1], 1 }

</bundles_post_ra>
